<compile_context>
chip_gen: v6e
topology: v6e:2x2x1
jax: 0.10.0
libtpu: 0.0.40
codegen_flags: <defaults>
</compile_context>

<pallas_src>
import jax
import jax.numpy as jnp
from jax.experimental import pallas as pl
from jax.experimental.pallas import tpu as pltpu

_LANES = 128          # vreg lane width
_MIN_TM = 512         # 256 KiB tile - floor for the multi-block path
_MAX_TM = 8192        # 4 MiB tile (8 MiB double-buffered; fits every generation)
_TARGET_STEPS = 4     # keep >= 2 grid steps so both v7x TensorCores get writeback work


def _round_up(x: int, m: int) -> int:
    return ((x + m - 1) // m) * m


def _pick_tile(rows: int) -> int:
    """Row-tile size for the (rows, 128) output slab."""
    if rows <= _MIN_TM:
        # Single block spanning the whole array: block_shape == full array dims,
        # so no (8,128)-divisibility requirement applies.
        return rows
    tm = _round_up(pl.cdiv(rows, _TARGET_STEPS), 8)   # sublane-aligned
    return max(_MIN_TM, min(tm, _MAX_TM))


def _learned_variance_kernel(var_ref, out_ref):
    # var_ref: SMEM (1,) learned scalar parameter
    # out_ref: VMEM (tm, 128) lane-dense output tile
    # Splat the SMEM scalar into one (1, 128) vreg, exp on the EUP (free slot),
    # then sublane-broadcast to the whole tile.
    row = jnp.full((1, _LANES), var_ref[0], dtype=jnp.float32)
    scale_row = jnp.exp(row * 10.0)
    out_ref[...] = jnp.broadcast_to(scale_row, out_ref.shape)


def learned_variance_forward(x: jax.Array, variance: jax.Array) -> jax.Array:
    """Pallas equivalent of LearnedVariance.forward.

    Args:
      x: array whose leading dimension gives N (its values are unused).
      variance: shape (1,) float32 learned parameter.
    Returns:
      (N, 1) float32 array filled with exp(variance * 10).
    """
    n = int(x.shape[0])
    if n == 0:
        return jnp.zeros((0, 1), dtype=jnp.float32)

    rows = pl.cdiv(n, _LANES)                 # lane-dense slab: (rows, 128)
    tm = _pick_tile(rows)
    grid = (pl.cdiv(rows, tm),)               # partial last block handled by Pallas

    slab = pl.pallas_call(
        _learned_variance_kernel,
        out_shape=jax.ShapeDtypeStruct((rows, _LANES), jnp.float32),
        grid=grid,
        in_specs=[pl.BlockSpec(memory_space=pltpu.MemorySpace.SMEM)],
        out_specs=pl.BlockSpec((tm, _LANES), lambda i: (i, 0)),
        compiler_params=pltpu.CompilerParams(
            dimension_semantics=("parallel",),
            vmem_limit_bytes=32 * 1024 * 1024,
        ),
    )(variance.reshape(1).astype(jnp.float32))

    if n % _LANES == 0:
        # Free metadata reshape: (n//128, 128) -> (n, 1), no copy kernel.
        return slab.reshape(n, 1)
    # Every slab element is identical, so taking the first n flattened elements
    # is exact for the ragged case (N % 128 != 0).
    return slab.reshape(-1)[:n].reshape(n, 1)


def learned_variance_get_variance(variance: jax.Array) -> jax.Array:
    """Equivalent of get_variance: a single scalar op, no kernel needed."""
    return jnp.clip(jnp.exp(variance.astype(jnp.float32) * 10.0), 1e-06, 1e06)


if __name__ == "__main__":
    key = jax.random.PRNGKey(0)

    # Deterministic parameter init, mirroring: nn.Parameter(init_val * torch.ones(1))
    init_val = 0.3
    variance = init_val * jnp.ones((1,), dtype=jnp.float32)

    # Only len(x) matters for the forward pass.
    #   n=8     : tiny single-block path
    #   n=300   : N % 128 != 0 (slice path)
    #   n=1024  : N % 128 == 0 (free-reshape path)
    #   n=70000 : multi-step grid with a partial last block
    for n in (8, 300, 1024, 70000):
        x = jax.random.normal(key, (n,), dtype=jnp.float32)
        out = jax.block_until_ready(learned_variance_forward(x, variance))

        ref = jnp.ones((n, 1), dtype=jnp.float32) * jnp.exp(variance * 10.0)
        assert out.shape == (n, 1), out.shape
        assert jnp.allclose(out, ref, rtol=1e-6, atol=1e-6), (n, out[:4], ref[:4])

    gv = jax.block_until_ready(learned_variance_get_variance(variance))
    assert jnp.allclose(gv, jnp.clip(jnp.exp(variance * 10.0), 1e-6, 1e6))

    print("KERNEL_OK")
</pallas_src>

<mosaic_0001>
module attributes {stable_mosaic.version = 11 : i64} {
  func.func @_learned_variance_kernel(%arg0: i32, %arg1: memref<1xf32, #tpu.memory_space<smem>>, %arg2: memref<1x128xf32, #tpu.memory_space<vmem>>) attributes {dimension_semantics = [#tpu.dimension_semantics<parallel>], iteration_bounds = array<i64: 1>, scalar_prefetch = 0 : i64, scratch_operands = 0 : i64, tpu.core_type = #tpu.core_type<tc>, window_params = [{transform_indices = @transform_0, window_bounds = array<i64: 1>}, {transform_indices = @transform_1, window_bounds = array<i64: 1, 128>}]} {
    %c0 = arith.constant 0 : index
    %0 = memref.load %arg1[%c0] : memref<1xf32, #tpu.memory_space<smem>>
    %1 = vector.broadcast %0 : f32 to vector<1x128xf32>
    %cst = arith.constant 1.000000e+01 : f32
    %2 = vector.broadcast %cst : f32 to vector<1x128xf32>
    %3 = arith.mulf %1, %2 : vector<1x128xf32>
    %4 = math.exp %3 : vector<1x128xf32>
    %c0_0 = arith.constant 0 : index
    %c0_1 = arith.constant 0 : index
    %5 = vector.load %arg2[%c0_0, %c0_1] : memref<1x128xf32, #tpu.memory_space<vmem>>, vector<1x128xf32>
    tpu.vector_store %arg2[%c0_0, %c0_1], %4 {strides = array<i32>} : memref<1x128xf32, #tpu.memory_space<vmem>>, vector<1x128xf32>,
    return
  }
  func.func @transform_0(%arg0: i32) -> i32 {
    %c0_i32 = arith.constant 0 : i32
    %c0_i32_0 = arith.constant 0 : i32
    return %c0_i32 : i32
  }
  func.func @transform_1(%arg0: i32) -> (i32, i32) {
    %c0_i32 = arith.constant 0 : i32
    %c0_i32_0 = arith.constant 0 : i32
    return %arg0, %c0_i32 : i32, i32
  }
}

</mosaic_0001>

<bundles_post_ra>
// kernel: tpu_custom_call.1
= control target key start
LH: loop header
LB: loop body
LE: loop exit
PB: predicated region body
PF: predicated region fallthrough
CT: control target
= control target key end

     0   :  { %s72_s0 = inlined_call_operand.<no memory space> [shape: f32[1], index: 0, kind: input, shape index: {}]   ;;  %s73_s1 = inlined_call_operand.hbm [shape: f32[1,128], index: 1, kind: output, shape index: {}]  }
   0x1   :  { %v11_v0 = vstv %s72_s0 }
   0x2   :  { %7 = vsyncpa [#allocation4], 0  ;;  %v12_v1 = vmul.f32 10.0, %v11_v0  ;;  %s55_s8 = smov [#allocation3]  }
   0x3   :  { %s22_s9 = sshll.u32 %s55_s8, 4  ;;  %s23_s9 = int_to_ptr.vmem [resolvable:$true] %s22_s9 }
   0x4   :  { %v13_v2 = vmul.f32 1.442695, %v12_v1  ;;  %s33_s10 = scalar_lea.vmem %s23_s9, 16  ;;  %s37_s11 = scalar_lea.vmem %s23_s9, 32 }
   0x5   :  { %p34_p0 = scmp.ne.s32.totalorder %s23_s9, %s33_s10  ;;  %p38_p1 = scmp.lt.s32.totalorder %s23_s9, %s23_s9 }
   0x6   :  { %31 = vpow2.f32 %v13_v2  ;;  %p39_p2 = scmp.lt.s32.totalorder %s37_s11, %s33_s10 }
   0x8   :  { %p40_p3 = por %p39_p2, %p38_p1 }
   0xa   :  { %p41_p4 = pnand %p40_p3, %p34_p0 }
  0x13   :  { %v32_v3 = vpop.eup %31 }
  0x14   :  { %15 = vst [vmem:[#allocation3] sm:$0x1] %v32_v3 }
  0x15   :  { %44 = shalt.err (!%p41_p4)
}
  0x16   :  { %25 = dma.vmem_to_hbm [thread:$0]  %s23_s9, 16, %s73_s1, [#allocation4]  }
  0x17   :  { %53 = dma.done.wait [#allocation4], 16  }
  0x18   :  { %54 = vsyncadd [#allocation4], 4294967280 }
  0x19   :  { %29 = vsyncpa [#allocation4], 1 }

</bundles_post_ra>
